<compile_context>
chip_gen: v7x
topology: tpu7x:2x2x1
jax: 0.10.0
libtpu: 0.0.40
codegen_flags: <defaults>
</compile_context>

<pallas_src>
import numpy as np
import jax
import jax.numpy as jnp
from jax.experimental import pallas as pl
from jax.experimental.pallas import tpu as pltpu


def _transition_kernel(x_ref, w_ref, b_ref, o_ref):
    # x_ref: (B_TILE, 4*Cin, H2*W2)   window-major, channels-first input tile
    # w_ref: (Cout, 4*Cin)            pool-folded 1x1 conv weight (already * 0.25)
    # b_ref: (Cout, 1)                conv bias (added post-pool; pooling commutes)
    # o_ref: (B_TILE, Cout, H2*W2)
    w = w_ref[...]
    b = b_ref[...]
    for i in range(o_ref.shape[0]):  # static unroll over the batch tile
        y = jnp.dot(w, x_ref[i], preferred_element_type=jnp.float32) + b
        o_ref[i] = y.astype(o_ref.dtype)


def transition_layers(x_nchw, weight_oi, bias_o, *, use_bf16=False, batch_tile=None):
    """DenseNet transition layer.

    x_nchw:    (N, Cin, H, W)
    weight_oi: (Cout, Cin)   -- PyTorch conv1.weight[:, :, 0, 0]
    bias_o:    (Cout,)
    returns    (N, Cout, H//2, W//2)
    """
    N, Cin, H, W = x_nchw.shape
    Cout = weight_oi.shape[0]
    assert H % 2 == 0 and W % 2 == 0
    H2, W2 = H // 2, W // 2
    HW4 = H2 * W2
    K = 4 * Cin

    out_dtype = x_nchw.dtype
    compute_dtype = jnp.bfloat16 if use_bf16 else x_nchw.dtype

    # Window-major, channels-first layout: k = (di*2 + dj)*Cin + c.
    # (Single input relayout; output needs no transpose at all.)
    x4 = x_nchw.reshape(N, Cin, H2, 2, W2, 2)
    x4 = jnp.transpose(x4, (0, 3, 5, 1, 2, 4)).reshape(N, K, HW4)
    x4 = x4.astype(compute_dtype)

    # Pool folded into the weight: W4[o, (di*2+dj)*Cin + c] = 0.25 * W[o, c].
    w4 = (jnp.tile(weight_oi, (1, 4)) * 0.25).astype(compute_dtype)   # (Cout, 4*Cin)
    b = bias_o.reshape(Cout, 1).astype(jnp.float32)                   # post-pool bias

    # Batch tile: biggest that keeps double-buffered input+output under a conservative
    # budget (safe for v5e's 16 MiB default scoped VMEM; v6e/v7x have more headroom).
    if batch_tile is None:
        per_elem = (K * HW4 * jnp.dtype(compute_dtype).itemsize
                    + Cout * HW4 * jnp.dtype(out_dtype).itemsize)
        budget = 8 * 1024 * 1024
        batch_tile = max(1, min(N, budget // max(1, 2 * per_elem)))
    while N % batch_tile != 0:   # keep tiles exact (no ragged last block)
        batch_tile -= 1
    grid = (N // batch_tile,)

    cost = pl.CostEstimate(
        flops=2 * N * Cout * K * HW4,
        transcendentals=0,
        bytes_accessed=(x4.size * x4.dtype.itemsize
                        + w4.size * w4.dtype.itemsize
                        + b.size * 4
                        + N * Cout * HW4 * jnp.dtype(out_dtype).itemsize),
    )

    out = pl.pallas_call(
        _transition_kernel,
        out_shape=jax.ShapeDtypeStruct((N, Cout, HW4), out_dtype),
        grid_spec=pltpu.PrefetchScalarGridSpec(
            num_scalar_prefetch=0,
            grid=grid,
            in_specs=[
                pl.BlockSpec((batch_tile, K, HW4), lambda n: (n, 0, 0)),
                pl.BlockSpec((Cout, K), lambda n: (0, 0)),
                pl.BlockSpec((Cout, 1), lambda n: (0, 0)),
            ],
            out_specs=pl.BlockSpec((batch_tile, Cout, HW4), lambda n: (n, 0, 0)),
        ),
        compiler_params=pltpu.CompilerParams(dimension_semantics=("parallel",)),
        cost_estimate=cost,
    )(x4, w4, b)

    # (N, Cout, H2*W2) -> NCHW: a pure reshape, no transpose needed.
    return out.reshape(N, Cout, H2, W2)


if __name__ == "__main__":
    key = jax.random.PRNGKey(0)
    k_x, k_w, k_b = jax.random.split(key, 3)

    N, Cin, H, W = 2, 4, 16, 16
    Cout = 8

    x = jax.random.normal(k_x, (N, Cin, H, W), dtype=jnp.float32)
    # PyTorch conv1.weight is (Cout, Cin, 1, 1); we use the squeezed (Cout, Cin).
    weight = jax.random.normal(k_w, (Cout, Cin), dtype=jnp.float32) * 0.1
    bias = jax.random.normal(k_b, (Cout,), dtype=jnp.float32) * 0.1

    # Pure-JAX reference: 1x1 conv + 2x2 avg pool (stride 2), NCHW.
    z_ref = jnp.einsum("nchw,oc->nohw", x, weight) + bias[None, :, None, None]
    y_ref = z_ref.reshape(N, Cout, H // 2, 2, W // 2, 2).mean(axis=(3, 5))

    # f32 path (bit-accurate semantics of the PyTorch module).
    y = jax.block_until_ready(transition_layers(x, weight, bias))
    assert y.shape == (N, Cout, H // 2, W // 2), y.shape
    np.testing.assert_allclose(np.asarray(y), np.asarray(y_ref), rtol=1e-5, atol=1e-5)

    # bf16-operand path (v6e/v7x MXU-friendly), f32 accumulation — looser tolerance.
    y_bf16 = jax.block_until_ready(transition_layers(x, weight, bias, use_bf16=True))
    np.testing.assert_allclose(np.asarray(y_bf16), np.asarray(y_ref), rtol=1e-1, atol=1e-1)

    print("KERNEL_OK")
</pallas_src>

<mosaic_0001>
module attributes {stable_mosaic.version = 11 : i64} {
  func.func @_transition_kernel(%arg0: i32, %arg1: memref<2x16x64xf32, #tpu.memory_space<vmem>>, %arg2: memref<8x16xf32, #tpu.memory_space<vmem>>, %arg3: memref<8x1xf32, #tpu.memory_space<vmem>>, %arg4: memref<2x8x64xf32, #tpu.memory_space<vmem>>) attributes {dimension_semantics = [#tpu.dimension_semantics<parallel>], iteration_bounds = array<i64: 1>, scalar_prefetch = 0 : i64, scratch_operands = 0 : i64, tpu.core_type = #tpu.core_type<tc>, window_params = [{transform_indices = @transform_0, window_bounds = array<i64: 2, 16, 64>}, {pipeline_mode = #tpu.pipeline_mode<synchronous>, transform_indices = @transform_1, window_bounds = array<i64: 8, 16>}, {pipeline_mode = #tpu.pipeline_mode<synchronous>, transform_indices = @transform_2, window_bounds = array<i64: 8, 1>}, {transform_indices = @transform_3, window_bounds = array<i64: 2, 8, 64>}]} {
    %c0 = arith.constant 0 : index
    %c0_0 = arith.constant 0 : index
    %0 = vector.load %arg2[%c0, %c0_0] : memref<8x16xf32, #tpu.memory_space<vmem>>, vector<8x16xf32>
    %c0_1 = arith.constant 0 : index
    %c0_2 = arith.constant 0 : index
    %1 = vector.load %arg3[%c0_1, %c0_2] : memref<8x1xf32, #tpu.memory_space<vmem>>, vector<8x1xf32>
    %c0_3 = arith.constant 0 : index
    %c0_4 = arith.constant 0 : index
    %c0_5 = arith.constant 0 : index
    %2 = vector.load %arg1[%c0_3, %c0_4, %c0_5] : memref<2x16x64xf32, #tpu.memory_space<vmem>>, vector<1x16x64xf32>
    %3 = vector.shape_cast %2 : vector<1x16x64xf32> to vector<16x64xf32>
    %cst = arith.constant dense<0.000000e+00> : vector<8x64xf32>
    %4 = tpu.matmul %0, %3, %cst {dimension_numbers = #tpu.dot_dimension_numbers<[1], [0], [0], [1], [0, 0, 1, 1], [], []>} : vector<8x16xf32>, vector<16x64xf32>, vector<8x64xf32> -> vector<8x64xf32>
    %5 = vector.broadcast %1 : vector<8x1xf32> to vector<8x64xf32>
    %6 = arith.addf %4, %5 : vector<8x64xf32>
    %c0_6 = arith.constant 0 : index
    %c0_7 = arith.constant 0 : index
    %c0_8 = arith.constant 0 : index
    %7 = vector.load %arg4[%c0_6, %c0_7, %c0_8] : memref<2x8x64xf32, #tpu.memory_space<vmem>>, vector<1x8x64xf32>
    %8 = vector.shape_cast %7 : vector<1x8x64xf32> to vector<8x64xf32>
    %9 = vector.shape_cast %6 : vector<8x64xf32> to vector<1x8x64xf32>
    tpu.vector_store %arg4[%c0_6, %c0_7, %c0_8], %9 {strides = array<i32>} : memref<2x8x64xf32, #tpu.memory_space<vmem>>, vector<1x8x64xf32>,
    %c1 = arith.constant 1 : index
    %c0_9 = arith.constant 0 : index
    %c0_10 = arith.constant 0 : index
    %10 = vector.load %arg1[%c1, %c0_9, %c0_10] : memref<2x16x64xf32, #tpu.memory_space<vmem>>, vector<1x16x64xf32>
    %11 = vector.shape_cast %10 : vector<1x16x64xf32> to vector<16x64xf32>
    %cst_11 = arith.constant dense<0.000000e+00> : vector<8x64xf32>
    %12 = tpu.matmul %0, %11, %cst_11 {dimension_numbers = #tpu.dot_dimension_numbers<[1], [0], [0], [1], [0, 0, 1, 1], [], []>} : vector<8x16xf32>, vector<16x64xf32>, vector<8x64xf32> -> vector<8x64xf32>
    %13 = vector.broadcast %1 : vector<8x1xf32> to vector<8x64xf32>
    %14 = arith.addf %12, %13 : vector<8x64xf32>
    %c1_12 = arith.constant 1 : index
    %c0_13 = arith.constant 0 : index
    %c0_14 = arith.constant 0 : index
    %15 = vector.load %arg4[%c1_12, %c0_13, %c0_14] : memref<2x8x64xf32, #tpu.memory_space<vmem>>, vector<1x8x64xf32>
    %16 = vector.shape_cast %15 : vector<1x8x64xf32> to vector<8x64xf32>
    %17 = vector.shape_cast %14 : vector<8x64xf32> to vector<1x8x64xf32>
    tpu.vector_store %arg4[%c1_12, %c0_13, %c0_14], %17 {strides = array<i32>} : memref<2x8x64xf32, #tpu.memory_space<vmem>>, vector<1x8x64xf32>,
    return
  }
  func.func @transform_0(%arg0: i32) -> (i32, i32, i32) {
    %c0_i32 = arith.constant 0 : i32
    %c0_i32_0 = arith.constant 0 : i32
    %c0_i32_1 = arith.constant 0 : i32
    return %arg0, %c0_i32, %c0_i32_0 : i32, i32, i32
  }
  func.func @transform_1(%arg0: i32) -> (i32, i32) {
    %c0_i32 = arith.constant 0 : i32
    %c0_i32_0 = arith.constant 0 : i32
    %c0_i32_1 = arith.constant 0 : i32
    return %c0_i32, %c0_i32_0 : i32, i32
  }
  func.func @transform_2(%arg0: i32) -> (i32, i32) {
    %c0_i32 = arith.constant 0 : i32
    %c0_i32_0 = arith.constant 0 : i32
    %c0_i32_1 = arith.constant 0 : i32
    return %c0_i32, %c0_i32_0 : i32, i32
  }
  func.func @transform_3(%arg0: i32) -> (i32, i32, i32) {
    %c0_i32 = arith.constant 0 : i32
    %c0_i32_0 = arith.constant 0 : i32
    %c0_i32_1 = arith.constant 0 : i32
    return %arg0, %c0_i32, %c0_i32_0 : i32, i32, i32
  }
}

</mosaic_0001>

<bundles_post_ra>
// kernel: tpu_custom_call.1
= control target key start
LH: loop header
LB: loop body
LE: loop exit
PB: predicated region body
PF: predicated region fallthrough
CT: control target
= control target key end

     0   :  { %8 = vsyncpa [#allocation3], 0  ;;  %s355_s0 = inlined_call_operand.hbm [shape: f32[2,16,64], index: 0, kind: input, shape index: {}]   ;;  %s356_s1 = inlined_call_operand.vmem [shape: f32[8,16], index: 1, kind: input, shape index: {}]   ;;  %s357_s2 = inlined_call_operand.vmem [shape: f32[8,1], index: 2, kind: input, shape index: {}]   ;;  %s358_s3 = inlined_call_operand.hbm [shape: f32[2,8,64], index: 3, kind: output, shape index: {}]  }
   0x1   :  { %9 = vsyncpa [#allocation4], 0  ;;  %s291_s12 = smov [#allocation2]   ;;  %s243_s16 = scalar_lea.hbm %s355_s0, 512 }
   0x2   :  { %s15_s13 = sshll.u32 %s291_s12, 4  ;;  %p244_p0 = scmp.ne.s32.totalorder %s355_s0, %s243_s16  ;;  %s16_s13 = int_to_ptr.vmem [resolvable:$true] %s15_s13 }
   0x3   :  { %p247_p1 = scmp.lt.u32.totalorder %s243_s16, %s355_s0 }
   0x5   :  { %p249_p2 = pnand %p247_p1, %p244_p0 }
   0x7   :  { %252 = shalt.err (!%p249_p2)
}
   0x8   :  { %s253_s21 = scalar_lea.vmem %s16_s13, 512  ;;  %p258_p4 = scmp.lt.s32.totalorder %s16_s13, %s16_s13 }
   0x9   :  { %p254_p3 = scmp.ne.s32.totalorder %s16_s13, %s253_s21  ;;  %p259_p5 = scmp.lt.s32.totalorder %s253_s21, %s253_s21 }
   0xb   :  { %p260_p6 = por %p259_p5, %p258_p4 }
   0xd   :  { %p261_p7 = pnand %p260_p6, %p254_p3 }
   0xf   :  { %264 = shalt.err (!%p261_p7)
}
  0x10   :  { %s292_s22 = smov 128   ;;  %s293_s23 = smov 8  }
  0x11   :  { %21 = dma.hbm_to_vmem [thread:$0]  %s355_s0, 512, %s16_s13, [#allocation3], %s292_s22, %s292_s22, %s293_s23  }
  0x12   :  { %287 = dma.done.wait [#allocation3], 512  }
  0x13   :  { %288 = vsyncadd [#allocation3], 4294966784  ;;  %v294_v0 = vmov 0.0|0.0   ;;  %vm295_vm0 = vmmov 0   ;;  %v296_v1 = vmov 0.0   ;;  %v297_v2 = vmov 0  }
  0x14   :  { %228 = vmatprep.subr.bf16.mxu0 %v294_v0  ;;  %231 = vmatprep.subr.bf16.mxu1 %v294_v0  ;;  %v31_v3 = vld [vmem:[#allocation2] sm:$0xff]  ;;  %v32_v4 = vld [vmem:[#allocation2 + $0x8] sm:$0xff]  ;;  %v115_v5 = vld [vmem:[#allocation2 + $0x10] sm:$0xff]  ;;  %vm38_vm1 = vcmask 130048   ;;  %s298_s29 = smov [#allocation5]   ;;  %vm112_vm2 = vcmask 523264  }
  0x15   :  { %218 = vmatprep.mubr.msk.f32.mxu0 %vm295_vm0, %v296_v1  ;;  %225 = vmatprep.mubr.msk.f32.mxu1 %vm295_vm0, %v296_v1  ;;  %v229_v6 = vpack.c.bf16 %v32_v4, %v31_v3  ;;  %v116_v7 = vld [vmem:[#allocation2 + $0x18] sm:$0xff]  ;;  %v30_v8 = vld [vmem:[%s357_s2] sm:$0xff]  ;;  %s194_s30 = sshll.u32 %s298_s29, 4  ;;  %s195_s30 = int_to_ptr.vmem [resolvable:$true] %s194_s30 }
  0x16   :  { %242 = vset.pattern.permute.xlu0 %v297_v2  ;;  %v232_v9 = vpack.c.bf16 %v116_v7, %v115_v5  ;;  %v29_v10 = vld [vmem:[%s356_s1] sm:$0xff]  ;;  %s265_s2 = scalar_lea.vmem %s195_s30, 256  ;;  %p270_p9 = scmp.lt.s32.totalorder %s195_s30, %s195_s30 }
  0x17   :  { %35 = vperm.xlu0 %242, %v30_v8   ;;  %230 = vmatpush3.bf16.msra.mxu0 %v229_v6  ;;  %p266_p8 = scmp.ne.s32.totalorder %s195_s30, %s265_s2  ;;  %p271_p10 = scmp.lt.s32.totalorder %s265_s2, %s265_s2 }
  0x18   :  { %233 = vmatpush3.bf16.msra.mxu1 %v232_v9 }
  0x19   :  { %p272_p11 = por %p271_p10, %p270_p9 }
  0x1a   :  { %219 = vmatmul.mubr.msk.f32.vlgmr.msra.gmra.mrb[0].mxu0 %vm38_vm1, %v29_v10 }
  0x1b   :  { %226 = vmatmul.mubr.msk.f32.vlgmr.msra.gmra.mrb[0].mxu1 %vm38_vm1, %v29_v10  ;;  %p273_p12 = pnand %p272_p11, %p266_p8 }
  0x96   :  { %v36_v11 = vpop.permute.xlu0 %35 }
  0xed   :  { %v108_v12 = vpop.f32.mrb[0].mxu0 }
  0xee   :  { %v109_v13 = vadd.f32 %v108_v12, %v36_v11  ;;  %v183_v14 = vpop.f32.mrb[0].mxu1  ;;  %v220_v15 = vpop.f32.mrb[1].mxu0 }
  0xef   :  { %v184_v16 = vadd.f32 %v183_v14, %v36_v11  ;;  %v227_v17 = vpop.f32.mrb[1].mxu1 }
  0xf0   :  { %113 = vst.msk [vmem:[#allocation5] sm:$0xff] %vm112_vm2, %v109_v13 }
  0xf1   :  { %188 = vst.msk [vmem:[#allocation5 + $0x8] sm:$0xff] %vm112_vm2, %v184_v16 }
  0xf2   :  { %276 = shalt.err (!%p273_p12)
}
  0xf3   :  { %s277_s5 = scalar_lea.hbm %s358_s3, 256 }
  0xf4   :  { %p278_p13 = scmp.ne.s32.totalorder %s358_s3, %s277_s5  ;;  %p281_p0 = scmp.lt.u32.totalorder %s277_s5, %s358_s3 }
  0xf6   :  { %p283_p1 = pnand %p281_p0, %p278_p13 }
  0xf8   :  { %286 = shalt.err (!%p283_p1)
}
  0xf9   :  { %200 = dma.vmem_to_hbm [thread:$0]  %s195_s30, 256, %s358_s3, [#allocation4], %s292_s22, %s292_s22, %s293_s23  }
  0xfa   :  { %289 = dma.done.wait [#allocation4], 256  }
  0xfb   :  { %290 = vsyncadd [#allocation4], 4294967040 }
  0xfc   :  { %204 = vsyncpa [#allocation3], 1 }
  0xfd   :  { %205 = vsyncpa [#allocation4], 1 }

</bundles_post_ra>
